<compile_context>
chip_gen: v7x
topology: tpu7x:2x2x1
jax: 0.10.0
libtpu: 0.0.40
codegen_flags: <defaults>
</compile_context>

<pallas_src>
import functools

import jax
import jax.numpy as jnp
from jax.experimental import pallas as pl
from jax.experimental.pallas import tpu as pltpu

_LANES = 128
_SUBLANES = 8
_PAD_LOGIT = -1e4                  # sigmoid(_PAD_LOGIT) == 0.0 in f32
_BLOCK_BYTES = 4 * 1024 * 1024     # combined (logits + targets) bytes per grid step


def _round_up(x, m):
    return ((x + m - 1) // m) * m


def _dice_kernel(logits_ref, targets_ref, score_ref,
                 inter_acc, m1_acc, m2_acc, *, smooth: float):
    """Grid: (num_samples, n_chunks).

    Each step reduces one (block_rows, 128) slab of one sample's features into
    (8, 128) partial sums; the last chunk of each sample folds them into that
    sample's dice score.
    """
    c = pl.program_id(1)

    @pl.when(c == 0)
    def _():
        inter_acc[...] = jnp.zeros_like(inter_acc)
        m1_acc[...] = jnp.zeros_like(m1_acc)
        m2_acc[...] = jnp.zeros_like(m2_acc)

    x = logits_ref[0].astype(jnp.float32)        # (block_rows, 128)
    t = targets_ref[0].astype(jnp.float32)       # (block_rows, 128)
    probs = jax.nn.sigmoid(x)                    # transcendental -> EUP slot

    groups = x.shape[0] // _SUBLANES

    def _fold(v):
        # (block_rows, 128) -> (groups, 8, 128); summing axis 0 is a pure
        # vreg-lockstep VPU add chain (no per-step cross-lane reduction).
        return jnp.sum(v.reshape(groups, _SUBLANES, _LANES), axis=0)

    inter_acc[...] += _fold(probs * t)
    m1_acc[...] += _fold(probs)
    m2_acc[...] += _fold(t)

    @pl.when(c == pl.num_programs(1) - 1)
    def _():
        inter = jnp.sum(inter_acc[...])
        m1 = jnp.sum(m1_acc[...])
        m2 = jnp.sum(m2_acc[...])
        score = 2.0 * (inter + smooth) / (m1 + m2 + smooth)
        # Lane-dense per-sample output block; wrapper reads [:, 0, 0].
        score_ref[...] = jnp.full(score_ref.shape, score, dtype=jnp.float32)


def dice_loss(logits, targets, smooth: float = 1.0):
    """Pallas TPU implementation of DiceLoss.forward."""
    num = logits.shape[0]
    d = 1
    for s in logits.shape[1:]:
        d *= s

    # Keep the caller's dtypes: bf16/int8 inputs stream at native width
    # (kernel upcasts to f32 for the arithmetic).
    logits2d = logits.reshape(num, d)
    targets2d = targets.reshape(num, d)

    # Sublane-dense tiling: view each sample's features as (rows, 128) and
    # stream block_rows rows per grid step (~_BLOCK_BYTES of input per step).
    rows = -(-d // _LANES)
    bytes_per_row = _LANES * (logits.dtype.itemsize + targets.dtype.itemsize)
    max_block_rows = max(_SUBLANES,
                         (_BLOCK_BYTES // bytes_per_row) // _SUBLANES * _SUBLANES)
    n_chunks = -(-rows // max_block_rows)
    block_rows = _round_up(-(-rows // n_chunks), _SUBLANES)
    rows_padded = block_rows * n_chunks
    d_pad = rows_padded * _LANES

    if d_pad != d:
        # Pad logits with a large negative (sigmoid -> 0 exactly), targets with 0,
        # so the padded tail contributes nothing to any of the three sums.
        logits2d = jnp.pad(logits2d, ((0, 0), (0, d_pad - d)),
                           constant_values=_PAD_LOGIT)
        targets2d = jnp.pad(targets2d, ((0, 0), (0, d_pad - d)),
                            constant_values=0)

    logits3d = logits2d.reshape(num, rows_padded, _LANES)
    targets3d = targets2d.reshape(num, rows_padded, _LANES)

    kernel = functools.partial(_dice_kernel, smooth=float(smooth))

    scores = pl.pallas_call(
        kernel,
        out_shape=jax.ShapeDtypeStruct((num, _SUBLANES, _LANES), jnp.float32),
        grid_spec=pltpu.PrefetchScalarGridSpec(
            num_scalar_prefetch=0,
            grid=(num, n_chunks),
            in_specs=[
                pl.BlockSpec((1, block_rows, _LANES), lambda s, c: (s, c, 0)),
                pl.BlockSpec((1, block_rows, _LANES), lambda s, c: (s, c, 0)),
            ],
            out_specs=pl.BlockSpec((1, _SUBLANES, _LANES),
                                   lambda s, c: (s, 0, 0)),
            scratch_shapes=[
                pltpu.VMEM((_SUBLANES, _LANES), jnp.float32),  # intersection
                pltpu.VMEM((_SUBLANES, _LANES), jnp.float32),  # m1 (probs)
                pltpu.VMEM((_SUBLANES, _LANES), jnp.float32),  # m2 (targets)
            ],
        ),
        compiler_params=pltpu.CompilerParams(
            # sample axis parallel (2-TC split on v7x), reduction axis arbitrary
            dimension_semantics=("parallel", "arbitrary"),
            # above v5e/v6e default scoped limits, still safe on v7x (64 MiB)
            vmem_limit_bytes=48 * 1024 * 1024,
        ),
    )(logits3d, targets3d)

    return 1.0 - jnp.sum(scores[:, 0, 0]) / num


def _dice_loss_ref(logits, targets, smooth: float = 1.0):
    num = logits.shape[0]
    probs = jax.nn.sigmoid(logits.astype(jnp.float32))
    m1 = probs.reshape(num, -1)
    m2 = targets.astype(jnp.float32).reshape(num, -1)
    inter = (m1 * m2).sum(axis=1)
    score = 2.0 * (inter + smooth) / (m1.sum(axis=1) + m2.sum(axis=1) + smooth)
    return 1.0 - score.sum() / num


if __name__ == "__main__":
    key = jax.random.PRNGKey(0)
    k1, k2, k3, k4 = jax.random.split(key, 4)

    # Main check: D = C*H*W = 1024 (multiple of 128 -> no padding path).
    N, C, H, W = 2, 4, 16, 16
    logits = jax.random.normal(k1, (N, C, H, W), dtype=jnp.float32)
    targets = (jax.random.uniform(k2, (N, C, H, W)) > 0.5).astype(jnp.float32)

    loss = jax.block_until_ready(dice_loss(logits, targets, smooth=1.0))
    ref = _dice_loss_ref(logits, targets, smooth=1.0)
    assert jnp.allclose(loss, ref, atol=1e-5, rtol=1e-5), (loss, ref)

    # Padded-D check: D = 3*10*10 = 300 (not a multiple of 128).
    logits_p = jax.random.normal(k3, (2, 3, 10, 10), dtype=jnp.float32)
    targets_p = (jax.random.uniform(k4, (2, 3, 10, 10)) > 0.5).astype(jnp.float32)
    loss_p = jax.block_until_ready(dice_loss(logits_p, targets_p, smooth=1.0))
    ref_p = _dice_loss_ref(logits_p, targets_p, smooth=1.0)
    assert jnp.allclose(loss_p, ref_p, atol=1e-5, rtol=1e-5), (loss_p, ref_p)

    print("KERNEL_OK")
</pallas_src>

<mosaic_0001>
module attributes {stable_mosaic.version = 11 : i64} {
  func.func @_dice_kernel(%arg0: i32, %arg1: i32, %arg2: memref<1x8x128xf32, #tpu.memory_space<vmem>>, %arg3: memref<1x8x128xf32, #tpu.memory_space<vmem>>, %arg4: memref<1x8x128xf32, #tpu.memory_space<vmem>>, %arg5: memref<8x128xf32, #tpu.memory_space<vmem>>, %arg6: memref<8x128xf32, #tpu.memory_space<vmem>>, %arg7: memref<8x128xf32, #tpu.memory_space<vmem>>) attributes {dimension_semantics = [#tpu.dimension_semantics<parallel>, #tpu.dimension_semantics<arbitrary>], iteration_bounds = array<i64: 2, 1>, scalar_prefetch = 0 : i64, scratch_operands = 3 : i64, tpu.core_type = #tpu.core_type<tc>, window_params = [{transform_indices = @transform_0, window_bounds = array<i64: 1, 8, 128>}, {transform_indices = @transform_1, window_bounds = array<i64: 1, 8, 128>}, {transform_indices = @transform_2, window_bounds = array<i64: 1, 8, 128>}]} {
    %c0_i32 = arith.constant 0 : i32
    %0 = arith.cmpi eq, %arg1, %c0_i32 : i32
    %1 = arith.extui %0 : i1 to i32
    %c0_i32_0 = arith.constant 0 : i32
    %2 = arith.cmpi ne, %1, %c0_i32_0 : i32
    scf.if %2 {
      %cst_23 = arith.constant 0.000000e+00 : f32
      %31 = vector.broadcast %cst_23 : f32 to vector<8x128xf32>
      %c0_24 = arith.constant 0 : index
      %c0_25 = arith.constant 0 : index
      %32 = vector.load %arg5[%c0_24, %c0_25] : memref<8x128xf32, #tpu.memory_space<vmem>>, vector<8x128xf32>
      tpu.vector_store %arg5[%c0_24, %c0_25], %31 {strides = array<i32>} : memref<8x128xf32, #tpu.memory_space<vmem>>, vector<8x128xf32>,
      %cst_26 = arith.constant 0.000000e+00 : f32
      %33 = vector.broadcast %cst_26 : f32 to vector<8x128xf32>
      %c0_27 = arith.constant 0 : index
      %c0_28 = arith.constant 0 : index
      %34 = vector.load %arg6[%c0_27, %c0_28] : memref<8x128xf32, #tpu.memory_space<vmem>>, vector<8x128xf32>
      tpu.vector_store %arg6[%c0_27, %c0_28], %33 {strides = array<i32>} : memref<8x128xf32, #tpu.memory_space<vmem>>, vector<8x128xf32>,
      %cst_29 = arith.constant 0.000000e+00 : f32
      %35 = vector.broadcast %cst_29 : f32 to vector<8x128xf32>
      %c0_30 = arith.constant 0 : index
      %c0_31 = arith.constant 0 : index
      %36 = vector.load %arg7[%c0_30, %c0_31] : memref<8x128xf32, #tpu.memory_space<vmem>>, vector<8x128xf32>
      tpu.vector_store %arg7[%c0_30, %c0_31], %35 {strides = array<i32>} : memref<8x128xf32, #tpu.memory_space<vmem>>, vector<8x128xf32>,
    } else {
    }
    %c0 = arith.constant 0 : index
    %c0_1 = arith.constant 0 : index
    %c0_2 = arith.constant 0 : index
    %3 = vector.load %arg2[%c0, %c0_1, %c0_2] : memref<1x8x128xf32, #tpu.memory_space<vmem>>, vector<1x8x128xf32>
    %4 = vector.shape_cast %3 : vector<1x8x128xf32> to vector<8x128xf32>
    %c0_3 = arith.constant 0 : index
    %c0_4 = arith.constant 0 : index
    %c0_5 = arith.constant 0 : index
    %5 = vector.load %arg3[%c0_3, %c0_4, %c0_5] : memref<1x8x128xf32, #tpu.memory_space<vmem>>, vector<1x8x128xf32>
    %6 = vector.shape_cast %5 : vector<1x8x128xf32> to vector<8x128xf32>
    %7 = arith.negf %4 : vector<8x128xf32>
    %8 = math.exp %7 : vector<8x128xf32>
    %cst = arith.constant 1.000000e+00 : f32
    %9 = vector.broadcast %cst : f32 to vector<8x128xf32>
    %10 = arith.addf %9, %8 : vector<8x128xf32>
    %11 = arith.divf %9, %10 : vector<8x128xf32>
    %c0_6 = arith.constant 0 : index
    %c0_7 = arith.constant 0 : index
    %12 = vector.load %arg5[%c0_6, %c0_7] : memref<8x128xf32, #tpu.memory_space<vmem>>, vector<8x128xf32>
    %13 = arith.mulf %11, %6 : vector<8x128xf32>
    %14 = vector.shape_cast %13 : vector<8x128xf32> to vector<1x8x128xf32>
    %cst_8 = arith.constant dense<0.000000e+00> : vector<8x128xf32>
    %15 = vector.multi_reduction <add>, %14, %cst_8 [0] : vector<1x8x128xf32> to vector<8x128xf32>
    %16 = arith.addf %12, %15 : vector<8x128xf32>
    %c0_9 = arith.constant 0 : index
    %c0_10 = arith.constant 0 : index
    %17 = vector.load %arg5[%c0_9, %c0_10] : memref<8x128xf32, #tpu.memory_space<vmem>>, vector<8x128xf32>
    tpu.vector_store %arg5[%c0_9, %c0_10], %16 {strides = array<i32>} : memref<8x128xf32, #tpu.memory_space<vmem>>, vector<8x128xf32>,
    %c0_11 = arith.constant 0 : index
    %c0_12 = arith.constant 0 : index
    %18 = vector.load %arg6[%c0_11, %c0_12] : memref<8x128xf32, #tpu.memory_space<vmem>>, vector<8x128xf32>
    %19 = vector.shape_cast %11 : vector<8x128xf32> to vector<1x8x128xf32>
    %cst_13 = arith.constant dense<0.000000e+00> : vector<8x128xf32>
    %20 = vector.multi_reduction <add>, %19, %cst_13 [0] : vector<1x8x128xf32> to vector<8x128xf32>
    %21 = arith.addf %18, %20 : vector<8x128xf32>
    %c0_14 = arith.constant 0 : index
    %c0_15 = arith.constant 0 : index
    %22 = vector.load %arg6[%c0_14, %c0_15] : memref<8x128xf32, #tpu.memory_space<vmem>>, vector<8x128xf32>
    tpu.vector_store %arg6[%c0_14, %c0_15], %21 {strides = array<i32>} : memref<8x128xf32, #tpu.memory_space<vmem>>, vector<8x128xf32>,
    %c0_16 = arith.constant 0 : index
    %c0_17 = arith.constant 0 : index
    %23 = vector.load %arg7[%c0_16, %c0_17] : memref<8x128xf32, #tpu.memory_space<vmem>>, vector<8x128xf32>
    %24 = vector.shape_cast %6 : vector<8x128xf32> to vector<1x8x128xf32>
    %cst_18 = arith.constant dense<0.000000e+00> : vector<8x128xf32>
    %25 = vector.multi_reduction <add>, %24, %cst_18 [0] : vector<1x8x128xf32> to vector<8x128xf32>
    %26 = arith.addf %23, %25 : vector<8x128xf32>
    %c0_19 = arith.constant 0 : index
    %c0_20 = arith.constant 0 : index
    %27 = vector.load %arg7[%c0_19, %c0_20] : memref<8x128xf32, #tpu.memory_space<vmem>>, vector<8x128xf32>
    tpu.vector_store %arg7[%c0_19, %c0_20], %26 {strides = array<i32>} : memref<8x128xf32, #tpu.memory_space<vmem>>, vector<8x128xf32>,
    %c0_i32_21 = arith.constant 0 : i32
    %28 = arith.cmpi eq, %arg1, %c0_i32_21 : i32
    %29 = arith.extui %28 : i1 to i32
    %c0_i32_22 = arith.constant 0 : i32
    %30 = arith.cmpi ne, %29, %c0_i32_22 : i32
    scf.if %30 {
      %c0_23 = arith.constant 0 : index
      %c0_24 = arith.constant 0 : index
      %31 = vector.load %arg5[%c0_23, %c0_24] : memref<8x128xf32, #tpu.memory_space<vmem>>, vector<8x128xf32>
      %32 = vector.shape_cast %31 : vector<8x128xf32> to vector<1x8x128xf32>
      %cst_25 = arith.constant dense<0.000000e+00> : vector<1xf32>
      %33 = vector.multi_reduction <add>, %32, %cst_25 [1, 2] : vector<1x8x128xf32> to vector<1xf32>
      %34 = vector.shape_cast %33 : vector<1xf32> to vector<1x1x1xf32>
      %35 = vector.extract %34[0, 0, 0] : f32 from vector<1x1x1xf32>
      %c0_26 = arith.constant 0 : index
      %c0_27 = arith.constant 0 : index
      %36 = vector.load %arg6[%c0_26, %c0_27] : memref<8x128xf32, #tpu.memory_space<vmem>>, vector<8x128xf32>
      %37 = vector.shape_cast %36 : vector<8x128xf32> to vector<1x8x128xf32>
      %cst_28 = arith.constant dense<0.000000e+00> : vector<1xf32>
      %38 = vector.multi_reduction <add>, %37, %cst_28 [1, 2] : vector<1x8x128xf32> to vector<1xf32>
      %39 = vector.shape_cast %38 : vector<1xf32> to vector<1x1x1xf32>
      %40 = vector.extract %39[0, 0, 0] : f32 from vector<1x1x1xf32>
      %c0_29 = arith.constant 0 : index
      %c0_30 = arith.constant 0 : index
      %41 = vector.load %arg7[%c0_29, %c0_30] : memref<8x128xf32, #tpu.memory_space<vmem>>, vector<8x128xf32>
      %42 = vector.shape_cast %41 : vector<8x128xf32> to vector<1x8x128xf32>
      %cst_31 = arith.constant dense<0.000000e+00> : vector<1xf32>
      %43 = vector.multi_reduction <add>, %42, %cst_31 [1, 2] : vector<1x8x128xf32> to vector<1xf32>
      %44 = vector.shape_cast %43 : vector<1xf32> to vector<1x1x1xf32>
      %45 = vector.extract %44[0, 0, 0] : f32 from vector<1x1x1xf32>
      %cst_32 = arith.constant 1.000000e+00 : f32
      %46 = arith.addf %35, %cst_32 : f32
      %cst_33 = arith.constant 2.000000e+00 : f32
      %47 = arith.mulf %cst_33, %46 : f32
      %48 = arith.addf %40, %45 : f32
      %cst_34 = arith.constant 1.000000e+00 : f32
      %49 = arith.addf %48, %cst_34 : f32
      %50 = arith.divf %47, %49 : f32
      %51 = vector.broadcast %50 : f32 to vector<1x8x128xf32>
      %c0_35 = arith.constant 0 : index
      %c0_36 = arith.constant 0 : index
      %c0_37 = arith.constant 0 : index
      %52 = vector.load %arg4[%c0_35, %c0_36, %c0_37] : memref<1x8x128xf32, #tpu.memory_space<vmem>>, vector<1x8x128xf32>
      tpu.vector_store %arg4[%c0_35, %c0_36, %c0_37], %51 {strides = array<i32>} : memref<1x8x128xf32, #tpu.memory_space<vmem>>, vector<1x8x128xf32>,
    } else {
    }
    return
  }
  func.func @transform_0(%arg0: i32, %arg1: i32) -> (i32, i32, i32) {
    %c0_i32 = arith.constant 0 : i32
    %c0_i32_0 = arith.constant 0 : i32
    return %arg0, %arg1, %c0_i32 : i32, i32, i32
  }
  func.func @transform_1(%arg0: i32, %arg1: i32) -> (i32, i32, i32) {
    %c0_i32 = arith.constant 0 : i32
    %c0_i32_0 = arith.constant 0 : i32
    return %arg0, %arg1, %c0_i32 : i32, i32, i32
  }
  func.func @transform_2(%arg0: i32, %arg1: i32) -> (i32, i32, i32) {
    %c0_i32 = arith.constant 0 : i32
    %c0_i32_0 = arith.constant 0 : i32
    %c0_i32_1 = arith.constant 0 : i32
    return %arg0, %c0_i32, %c0_i32_0 : i32, i32, i32
  }
}

</mosaic_0001>

<bundles_post_ra>
// kernel: tpu_custom_call.1
= control target key start
LH: loop header
LB: loop body
LE: loop exit
PB: predicated region body
PF: predicated region fallthrough
CT: control target
= control target key end

     0   :  { %7 = vsyncpa [#allocation6], 0  ;;  %s891_s0 = inlined_call_operand.hbm [shape: f32[2,8,128], index: 0, kind: input, shape index: {}]   ;;  %s892_s1 = inlined_call_operand.hbm [shape: f32[2,8,128], index: 1, kind: input, shape index: {}]   ;;  %s893_s2 = inlined_call_operand.hbm [shape: f32[2,8,128], index: 2, kind: output, shape index: {}]  }
   0x1   :  { %9 = vsyncpa [#allocation6 + $0x1], 0 }
   0x2   :  { %10 = vsyncpa [#allocation9], 0 }
   0x3   :  { %12 = vsyncpa [#allocation9 + $0x1], 0 }
   0x4   :  { %13 = vsyncpa [#allocation7], 0 }
   0x5   :  { %15 = vsyncpa [#allocation7 + $0x1], 0  ;;  %s666_s9 = smov 0   ;;  %s668_s10 = smov 0  }
   0x6   :  { %s670_s11 = smov 0   ;;  %s672_s12 = smov 0  }
   0x7   :  { %s674_s13 = smov 0   ;;  %s676_s14 = smov 0  }
   0x8 LB: > { %s402_s15 = sadd.s32 4294967295, %s646_s14   ;;  %s403_s16 = sadd.s32 4294967294, %s646_s14   ;;  %s646_s14 = sphi %s676_s14, %s21_s14   ;;  %s642_s13 = sphi %s674_s13, %s913_s13   ;;  %s638_s12 = sphi %s672_s12, %s912_s12   ;;  %s634_s11 = sphi %s670_s11, %s911_s11   ;;  %s630_s10 = sphi %s668_s10, %s910_s10   ;;  %s626_s9 = sphi %s666_s9, %s909_s9  }
   0x9   : > { %s33_s17 = sadd.s32 1, %s642_s13  ;;  %s42_s18 = sadd.s32 1, %s634_s11 }
   0xa   : > { %p35_p0 = scmp.ge.s32.totalorder %s33_s17, 2  ;;  %p49_p1 = scmp.ne.s32.totalorder %s634_s11, %s630_s10 }
   0xb   : > { %p50_p2 = scmp.eq.s32.totalorder %s646_s14, 0  ;;  %p55_p3 = scmp.ne.s32.totalorder %s630_s10, %s626_s9 }
   0xc   : > { %s915_s17 = smov (%p35_p0, %s33_s17), 0  ;;  %p56_p5 = scmp.eq.s32.totalorder %s402_s15, 0 }
   0xd   : > { %p707_p4 = por %p50_p2, %p49_p1  ;;  %s37_s20 = ssub.s32 %s642_s13, %s915_s17 }
   0xe   : > { %p107_p6 = scmp.eq.s32.totalorder %s402_s15, 1  ;;  %p40_p7 = scmp.eq.s32.totalorder %s37_s20, 0 }
   0xf   : > { %p713_p8 = por %p56_p5, %p55_p3  ;;  %p113_p10 = scmp.eq.s32.totalorder %s403_s16, 1 }
  0x10   : > { %p717_p9 = por %p107_p6, %p49_p1  ;;  %p444_p13 = scmp.lt.s32.totalorder %s646_s14, 2 }
  0x11   : > { %s897_s21 = scalar_select %p713_p8, 1, 0 }
  0x12   : > { %s898_s22 = scalar_select %p717_p9, 1, 0 }
  0x13   : > { %s722_s23 = scalar_select %p40_p7, %s634_s11, %s42_s18  }
  0x14   : > { %p724_p11 = por %p113_p10, %p55_p3  ;;  %s731_s25 = sand.u32 1, %s634_s11  }
  0x15   : > { %s406_s26 = sshll.u32 %s731_s25, 3  ;;  %s407_s27 = sshll.u32 %s642_s13, 7 }
  0x16   : > { %s899_s24 = scalar_select %p724_p11, 1, 0 }
  0x17   : > { %s740_s30 = scalar_lea.hbm %s891_s0, %s407_s27  ;;  %s137_s3 = scalar_lea.vmem [#allocation5], %s406_s26 }
  0x18   : > { %s145_s4 = sshll.u32 %s137_s3, 4  ;;  %p748_p0 = pnand %p444_p13, %p707_p4  ;;  %s744_s4 = int_to_ptr.vmem [resolvable:$true] %s145_s4 }
  0x19   : > { %s134_s6 = scalar_lea.sflag [#allocation6], %s731_s25  ;;  %s500_s7 = scalar_lea.hbm %s740_s30, 128 }
  0x1a   : > { %p501_p3 = scmp.ne.s32.totalorder %s740_s30, %s500_s7  ;;  %p502_p5 = pneg %p748_p0 }
  0x1b   : > { %s505_s16 = scalar_lea.hbm %s891_s0, 256  ;;  %p506_p4 = scmp.lt.u32.totalorder %s740_s30, %s891_s0 }
  0x1c   : > { %p503_p6 = pnand %p502_p5, %p501_p3  ;;  %p507_p10 = scmp.lt.u32.totalorder %s505_s16, %s500_s7 }
  0x1d   : > { %p509_p12 = scmp.lt.u32.totalorder %s500_s7, %s740_s30 }
  0x1e   : > { %p504_p7 = pneg %p503_p6  ;;  %p508_p13 = por %p507_p10, %p506_p4 }
  0x20   : > { %p510_p1 = por %p509_p12, %p508_p13 }
  0x22   : > { %p511_p2 = pnand %p510_p1, %p504_p7 }
  0x24   : > { %514 = shalt.err (!%p511_p2)
}
  0x25   : > { %s515_s20 = scalar_lea.vmem %s744_s4, 128  ;;  %s648_s28 = smov [#allocation5]  }
  0x26   : > { %p516_p3 = scmp.ne.s32.totalorder %s744_s4, %s515_s20  ;;  %s520_s29 = sshll.u32 %s648_s28, 4  ;;  %s521_s29 = int_to_ptr.vmem [resolvable:$false] %s520_s29 }
  0x27   : > { %s522_s3 = scalar_lea.vmem %s521_s29, 256  ;;  %p523_p9 = scmp.lt.s32.totalorder %s744_s4, %s521_s29 }
  0x28   : > { %p518_p6 = pnand %p516_p3, %p502_p5  ;;  %p524_p4 = scmp.lt.s32.totalorder %s522_s3, %s515_s20 }
  0x2a   : > { %p519_p11 = pneg %p518_p6  ;;  %p525_p10 = por %p524_p4, %p523_p9 }
  0x2c   : > { %p526_p12 = pnand %p525_p10, %p519_p11 }
  0x2e   : > { %529 = shalt.err (!%p526_p12)
}
  0x2f   : > { %436 = dma.hbm_to_vmem [thread:$0]  (!%p748_p0), %s740_s30, 128, %s744_s4, %s134_s6  }
  0x30   : > { %p901_p1 = scmp.lt.s32.totalorder %s646_s14, 3  ;;  %p902_p2 = scmp.ge.s32.totalorder %s646_s14, 1 }
  0x31   : > { %s793_s16 = scalar_lea.hbm %s892_s1, %s407_s27  ;;  %s156_s18 = scalar_lea.vmem [#allocation8], %s406_s26 }
  0x32   : > { %p784_p7 = pnand %p902_p2, %p901_p1  ;;  %s164_s19 = sshll.u32 %s156_s18, 4  ;;  %s165_s19 = int_to_ptr.vmem [resolvable:$true] %s164_s19 }
  0x33   : > { %s153_s30 = scalar_lea.sflag [#allocation9], %s731_s25  ;;  %s530_s4 = scalar_lea.hbm %s793_s16, 128 }
  0x34   : > { %s903_s7 = scalar_select %p784_p7, 1, 0 }
  0x35   : > { %p531_p9 = scmp.ne.s32.totalorder %s793_s16, %s530_s4  ;;  %s535_s27 = scalar_lea.hbm %s892_s1, 256 }
  0x36   : > { %p536_p3 = scmp.lt.u32.totalorder %s793_s16, %s892_s1  ;;  %p537_p6 = scmp.lt.u32.totalorder %s535_s27, %s530_s4 }
  0x37   : > { %p533_p11 = pnand %p531_p9, %p502_p5  ;;  %p539_p10 = scmp.lt.u32.totalorder %s530_s4, %s793_s16 }
  0x38   : > { %p538_p4 = por %p537_p6, %p536_p3 }
  0x39   : > { %p534_p13 = pneg %p533_p11 }
  0x3a   : > { %p540_p12 = por %p539_p10, %p538_p4 }
  0x3c   : > { %p541_p1 = pnand %p540_p12, %p534_p13 }
  0x3e   : > { %544 = shalt.err (!%p541_p1)
}
  0x3f   : > { %s545_s25 = scalar_lea.vmem %s165_s19, 128  ;;  %s649_s26 = smov [#allocation8]  }
  0x40   : > { %p546_p2 = scmp.ne.s32.totalorder %s165_s19, %s545_s25  ;;  %s550_s3 = sshll.u32 %s649_s26, 4  ;;  %s551_s3 = int_to_ptr.vmem [resolvable:$false] %s550_s3 }
  0x41   : > { %s552_s8 = scalar_lea.vmem %s551_s3, 256  ;;  %p553_p8 = scmp.lt.s32.totalorder %s165_s19, %s551_s3 }
  0x42   : > { %p548_p9 = pnand %p546_p2, %p502_p5  ;;  %p554_p7 = scmp.lt.s32.totalorder %s552_s8, %s545_s25 }
  0x44   : > { %p549_p11 = pneg %p548_p9  ;;  %p555_p3 = por %p554_p7, %p553_p8 }
  0x46   : > { %p556_p6 = pnand %p555_p3, %p549_p11 }
  0x48   : > { %559 = shalt.err (!%p556_p6)
}
  0x49   : > { %439 = dma.hbm_to_vmem [thread:$0]  (!%p748_p0), %s793_s16, 128, %s165_s19, %s153_s30  }
  0x4a   : > { %p904_p13 = scmp.ne.s32.totalorder %s903_s7, 0 }
  0x4b   : > { %s820_s15 = sand.u32 (!%p904_p13), 1, %s630_s10   ;;  %p905_p8 = scmp.ne.s32.totalorder (!%p904_p13), %s897_s21, 0 }
  0x4c   : > { %173 = sbr.rel (%p904_p13) target bundleno = 407 (0x197), region = 28  ;;  %s823_s18 = sshll.u32 (!%p904_p13), %s820_s15, 3 }
  0x4d   : > { %s176_s4 = scalar_lea.sflag (!%p904_p13), [#allocation6], %s820_s15  ;;  %s179_s6 = scalar_lea.vmem (!%p904_p13), [#allocation5], %s823_s18 }
  0x53   : > { %613 = dma.done.wait (%p905_p8), %s176_s4, 128  }
  0x54   : > { %615 = vsyncadd (%p905_p8), %s176_s4, 4294967168  ;;  %s185_s5 = scalar_lea.sflag [#allocation9], %s820_s15  ;;  %s188_s7 = scalar_lea.vmem [#allocation8], %s823_s18 }
  0x55   : > { %617 = dma.done.wait (%p905_p8), %s185_s5, 128  }
  0x56   : > { %619 = vsyncadd (%p905_p8), %s185_s5, 4294967168  ;;  %v222_v0 = vld [vmem:[%s188_s7] sm:$0xff]  ;;  %v221_v1 = vld [vmem:[%s179_s6] sm:$0xff]  ;;  %s416_s28 = sshll.u32 %s638_s12, 7  ;;  %s213_s25 = scalar_lea.vmem [#allocation10], %s823_s18 }
  0x57   : > { %266 = vadd.xlane.f32.xlu1 %v222_v0  ;;  %v414_v2 = vmul.f32 -1.442695, %v221_v1  ;;  %s299_s26 = sshll.u32 %s213_s25, 4  ;;  %s842_s5 = scalar_lea.hbm %s893_s2, %s416_s28  ;;  %s844_s26 = int_to_ptr.vmem [resolvable:$true] %s299_s26 }
  0x58   : > { %s286_s7 = scalar_lea.sflag [#allocation7], %s820_s15  ;;  %p906_p5 = scmp.ne.s32.totalorder %s898_s22, 0 }
  0x59   : > { %494 = vpow2.f32 %v414_v2  ;;  %s650_s12 = smov [#allocation10]  }
  0x5a   : > { %s564_s18 = sshll.u32 %s650_s12, 4  ;;  %s565_s18 = int_to_ptr.vmem [resolvable:$false] %s564_s18 }
  0x5b   : > { %p567_p10 = scmp.lt.s32.totalorder %s844_s26, %s565_s18 }
  0x63   : > { %v495_v3 = vpop.eup %494 }
  0x64   : > { %v226_v4 = vadd.f32 1.0, %v495_v3 }
  0x66   : > { %496 = vrcp.f32 %v226_v4 }
  0x70   : > { %v497_v5 = vpop.eup %496 }
  0x71   : > { %v230_v6 = vmul.f32 %v497_v5, %v222_v0 }
  0x73   : > { %246 = vadd.xlane.f32.xlu0 %v230_v6 }
  0x77   : > { %256 = vadd.xlane.f32.xlu0 %v497_v5 }
  0xe4   : > { %v267_v7 = vpop.xlane.xlu1 %266 }
  0xe5   : > { %v268_v8 = vrot.slane %v267_v7, 4 }
  0xe7   : > { %v269_v9 = vadd.f32 %v268_v8, %v267_v7 }
  0xe9   : > { %v270_v13 = vrot.slane %v269_v9, 2 }
  0xeb   : > { %v271_v19 = vadd.f32 %v270_v13, %v269_v9 }
  0xed   : > { %v272_v24 = vrot.slane %v271_v19, 1 }
  0xef   : > { %v273_v27 = vadd.f32 %v272_v24, %v271_v19 }
 0x100   : > { %v247_v10 = vpop.xlane.xlu0 %246 }
 0x101   : > { %v248_v11 = vrot.slane %v247_v10, 4 }
 0x103   : > { %v249_v12 = vadd.f32 %v248_v11, %v247_v10 }
 0x104   : > { %v257_v14 = vpop.xlane.xlu0 %256 }
 0x105   : > { %v250_v15 = vrot.slane %v249_v12, 2  ;;  %v258_v16 = vrot.slane %v257_v14, 4 }
 0x107   : > { %v259_v17 = vadd.f32 %v258_v16, %v257_v14  ;;  %v251_v18 = vadd.f32 %v250_v15, %v249_v12 }
 0x109   : > { %v260_v20 = vrot.slane %v259_v17, 2  ;;  %v252_v21 = vrot.slane %v251_v18, 1 }
 0x10b   : > { %v261_v22 = vadd.f32 %v260_v20, %v259_v17  ;;  %v253_v23 = vadd.f32 %v252_v21, %v251_v18 }
 0x10d   : > { %419 = vpush %v253_v23  ;;  %v262_v25 = vrot.slane %v261_v22, 1 }
 0x10f   : > { %v263_v26 = vadd.f32 %v262_v25, %v261_v22 }
 0x111   : > { %421 = vpush %v263_v26 }
 0x112   : > { %423 = vpush %v273_v27 }
 0x13e   : > { %s420_s21 = spop %419 }
 0x13f   : > { %s275_s27 = sadd.f32 1.0, %s420_s21  ;;  %s560_s21 = scalar_lea.vmem %s844_s26, 128 }
 0x140   : > { %p561_p0 = scmp.ne.s32.totalorder %s844_s26, %s560_s21 }
 0x141   : > { %s276_s29 = smul.f32 2.0, %s275_s27 }
 0x142   : > { %s422_s16 = spop %421  ;;  %p562_p7 = pnand %p561_p0, %p906_p5 }
 0x143   : > { %s424_s19 = spop %423 }
 0x144   : > { %s277_s30 = sadd.f32 %s424_s19, %s422_s16  ;;  %p563_p4 = pneg %p562_p7 }
 0x145   : > { %s566_s16 = scalar_lea.vmem %s565_s18, 256 }
 0x146   : > { %s278_s20 = sadd.f32 1.0, %s277_s30  ;;  %p568_p12 = scmp.lt.s32.totalorder %s566_s16, %s560_s21 }
 0x148   : > { %v279_v28 = vstv %s278_s20  ;;  %p569_p1 = por %p568_p12, %p567_p10 }
 0x149   : > { %498 = vrcp.f32 %v279_v28 }
 0x14a   : > { %p570_p2 = pnand %p569_p1, %p563_p4 }
 0x153   : > { %v499_v29 = vpop.eup %498 }
 0x154   : > { %425 = vpush %v499_v29 }
 0x185   : > { %s426_s3 = spop %425 }
 0x186   : > { %s282_s8 = smul.f32 %s426_s3, %s276_s29 }
 0x188   : > { %v283_v30 = vstv %s282_s8 }
 0x189   : > { %284 = vst [vmem:[%s213_s25] sm:$0xff] %v283_v30 }
 0x18a   : > { %573 = shalt.err (!%p570_p2)
}
 0x18b   : > { %s574_s15 = scalar_lea.hbm %s842_s5, 128  ;;  %s578_s20 = scalar_lea.hbm %s893_s2, 256 }
 0x18c   : > { %p575_p9 = scmp.ne.s32.totalorder %s842_s5, %s574_s15  ;;  %p579_p6 = scmp.lt.u32.totalorder %s842_s5, %s893_s2 }
 0x18d   : > { %p580_p13 = scmp.lt.u32.totalorder %s578_s20, %s574_s15  ;;  %p582_p0 = scmp.lt.u32.totalorder %s574_s15, %s842_s5 }
 0x18e   : > { %p576_p11 = pnand %p575_p9, %p906_p5 }
 0x18f   : > { %p581_p8 = por %p580_p13, %p579_p6 }
 0x190   : > { %p577_p3 = pneg %p576_p11 }
 0x191   : > { %p583_p7 = por %p582_p0, %p581_p8 }
 0x193   : > { %p584_p4 = pnand %p583_p7, %p577_p3 }
 0x195   : > { %587 = shalt.err (!%p584_p4)
}
 0x196   : > { %431 = dma.vmem_to_hbm [thread:$0]  (%p906_p5), %s844_s26, 128, %s842_s5, %s286_s7  }
 0x197 PF: > { %s311_s29 = sand.u32 1, %s626_s9   ;;  %p907_p10 = scmp.ne.s32.totalorder %s899_s24, 0 }
 0x198   : > { %p908_p12 = scmp.ge.s32.totalorder %s646_s14, 2  ;;  %s312_s25 = scalar_lea.sflag [#allocation7], %s311_s29 }
 0x19a   : > { %p441_p1 = pnand %p908_p12, %p907_p10 }
 0x19c   : > { %621 = dma.done.wait (!%p441_p1), %s312_s25, 128  }
 0x19d   : > { %623 = vsyncadd (!%p441_p1), %s312_s25, 4294967168  ;;  %s21_s14 = sadd.s32 1, %s646_s14   ;;  %s909_s9 = smov %s630_s10 }
 0x19e   : > { %p18_p2 = scmp.ge.s32.totalorder %s21_s14, 4   ;;  %s910_s10 = smov %s634_s11 }
 0x19f   : > { %s911_s11 = smov %s722_s23  ;;  %s912_s12 = smov %s642_s13 }
 0x1a0   : > { %s913_s13 = smov %s915_s17  ;;  %20 = sbr.rel (!%p18_p2) target bundleno = 8 (0x8), region = 94 }
 0x1a7   :  { %317 = vsyncpa [#allocation6], 1 }
 0x1a8   :  { %319 = vsyncpa [#allocation6 + $0x1], 1 }
 0x1a9   :  { %320 = vsyncpa [#allocation9], 1 }
 0x1aa   :  { %322 = vsyncpa [#allocation9 + $0x1], 1 }
 0x1ab   :  { %323 = vsyncpa [#allocation7], 1 }
 0x1ac   :  { %325 = vsyncpa [#allocation7 + $0x1], 1 }

</bundles_post_ra>
